<compile_context>
chip_gen: v5e
topology: v5e:2x2
jax: 0.10.0
libtpu: 0.0.40
codegen_flags: <defaults>
</compile_context>

<pallas_src>
import jax
import jax.numpy as jnp
from jax.experimental import pallas as pl
from jax.experimental.pallas import tpu as pltpu


def _round_up(n, m):
    return ((n + m - 1) // m) * m


def _default_block_b():
    """Generation-aware lane-block size.

    Double-buffered footprint is ~128 B per lane of block (input (8, blk) f32
    x2 buffers + sublane-padded output (8, blk) f32 x2 buffers), so size the
    block to roughly half of physical VMEM, clamped to [64K, 256K] lanes:
      v5e/v6e (128 MiB VMEM) -> 256K lanes (~32 MiB of buffers)
      v7x     ( 64 MiB VMEM) -> 256K lanes (~32 MiB of buffers)
    """
    try:
        vmem = pltpu.get_tpu_info().vmem_capacity_bytes
    except Exception:
        vmem = 64 << 20  # conservative fallback
    blk = (vmem // 2) // 128
    blk = max(64 * 1024, min(blk, 256 * 1024))
    return _round_up(blk, 128)


def netcbs_kernel(w_ref, b_ref, x_ref, o_ref):
    """One (F, blk) lane-dense activation tile -> (1, blk) output tile.

    w_ref: (F, 1)   f32 VMEM (resident: constant index_map, DMA'd once)
    b_ref: (1,)     f32 SMEM
    x_ref: (F, blk) f32 VMEM, batch along the 128-lane axis
    o_ref: (1, blk) f32 VMEM
    """
    # Whole-tile VPU multiply (weight column broadcast over lanes), then an
    # XLU sublane reduce: ~1 full vreg load + 1-2 VALU ops per 128 outputs,
    # reduction in the otherwise-idle XLU slot -> HBM-bound.
    prod = x_ref[...] * w_ref[...]
    o_ref[...] = (jnp.sum(prod, axis=0, keepdims=True) + b_ref[0]).astype(o_ref.dtype)


def netcbs_forward(x, weight, bias, *, block_b=None, feature_major=False):
    """Linear(5, 1) forward: x @ weight.T + bias, returned with shape (B, 1).

    x:      (B, 5) f32   (or (5, B) if feature_major=True)
    weight: (1, 5) f32   (PyTorch nn.Linear layout)
    bias:   (1,)   f32
    """
    out_features, in_features = weight.shape
    assert out_features == 1, "NetCBS kernel assumes fc1 has a single output feature"
    assert bias.shape == (out_features,)

    if feature_major:
        F, B = x.shape
    else:
        B, F = x.shape
    assert F == in_features

    if block_b is None:
        block_b = _default_block_b()

    # Lane-dense blocking: batch padded to a multiple of 128 lanes and of the
    # block size.  Clamp the block for small batches, and keep >= ~4 grid
    # steps for moderate batches so both v7x TensorCores get work and
    # double-buffering has something to overlap with.
    blk = min(block_b, _round_up(B, 128))
    blk = min(blk, _round_up(max(B // 4, 128), 128))
    blk = _round_up(blk, 128)
    B_pad = _round_up(B, blk)
    grid = (B_pad // blk,)

    # Layout plumbing: the kernel wants feature-major (F, B_pad) so the batch
    # rides the lane axis.  With feature_major=True (producer already emits
    # (F, B)) this is just a pad; for the PyTorch (B, F) layout we pay one
    # extra HBM pass for the pad+transpose — fix upstream if this kernel is
    # ever the bottleneck at large B.
    if feature_major:
        x_t = jnp.pad(x, ((0, 0), (0, B_pad - B)))      # (F, B_pad)
    else:
        x_t = jnp.pad(x, ((0, B_pad - B), (0, 0))).T    # (F, B_pad)

    w_col = weight.reshape(in_features, 1)              # (F, 1) resident VMEM tile

    # Double-buffered VMEM footprint: input (8, blk) f32 x2 + output (8, blk)
    # f32 x2 (sublane-padded).  Give headroom; cap under v7x's 64 MiB/TC.
    footprint = 4 * (8 * blk * 4)
    vmem_limit = min(footprint + (16 << 20), 56 << 20)

    out_t = pl.pallas_call(
        netcbs_kernel,
        out_shape=jax.ShapeDtypeStruct((1, B_pad), x.dtype),
        grid_spec=pltpu.PrefetchScalarGridSpec(
            num_scalar_prefetch=0,
            grid=grid,
            in_specs=[
                pl.BlockSpec((in_features, 1), lambda i: (0, 0)),        # weight (resident)
                pl.BlockSpec(memory_space=pltpu.MemorySpace.SMEM),       # bias scalar
                pl.BlockSpec((in_features, blk), lambda i: (0, i)),      # x^T tile
            ],
            out_specs=pl.BlockSpec((1, blk), lambda i: (0, i)),
        ),
        compiler_params=pltpu.CompilerParams(
            dimension_semantics=("parallel",),
            vmem_limit_bytes=vmem_limit,
        ),
    )(w_col, bias, x_t)

    # Back to PyTorch layout (B, 1); drop padded rows.
    return out_t[:, :B].T


if __name__ == "__main__":
    key = jax.random.PRNGKey(0)
    k_x, k_w, k_b, k_x2, k_x3 = jax.random.split(key, 5)

    in_features, out_features = 5, 1

    # PyTorch Linear default init: U(-1/sqrt(fan_in), 1/sqrt(fan_in)).
    bound = 1.0 / jnp.sqrt(jnp.float32(in_features))
    weight = jax.random.uniform(
        k_w, (out_features, in_features), jnp.float32, minval=-bound, maxval=bound)
    bias = jax.random.uniform(
        k_b, (out_features,), jnp.float32, minval=-bound, maxval=bound)

    # Case 1: the module's shipped tiny batch.
    batch = 8
    x = jax.random.normal(k_x, (batch, in_features), dtype=jnp.float32)
    out = jax.block_until_ready(netcbs_forward(x, weight, bias))
    ref = x @ weight.T + bias
    assert out.shape == (batch, out_features)
    assert jnp.allclose(out, ref, atol=1e-5, rtol=1e-5)

    # Case 2: batch not a multiple of 128 -> padding + multiple grid steps.
    batch2 = 300
    x2 = jax.random.normal(k_x2, (batch2, in_features), dtype=jnp.float32)
    out2 = jax.block_until_ready(netcbs_forward(x2, weight, bias, block_b=128))
    ref2 = x2 @ weight.T + bias
    assert out2.shape == (batch2, out_features)
    assert jnp.allclose(out2, ref2, atol=1e-5, rtol=1e-5)

    # Case 3: feature-major producer path (no HBM-side transpose), 4 grid steps.
    batch3 = 2048
    x3 = jax.random.normal(k_x3, (batch3, in_features), dtype=jnp.float32)
    out3 = jax.block_until_ready(
        netcbs_forward(x3.T, weight, bias, block_b=512, feature_major=True))
    ref3 = x3 @ weight.T + bias
    assert out3.shape == (batch3, out_features)
    assert jnp.allclose(out3, ref3, atol=1e-5, rtol=1e-5)

    print("KERNEL_OK")
</pallas_src>

<mosaic_0001>
module attributes {stable_mosaic.version = 11 : i64} {
  func.func @netcbs_kernel(%arg0: i32, %arg1: memref<5x1xf32, #tpu.memory_space<vmem>>, %arg2: memref<1xf32, #tpu.memory_space<smem>>, %arg3: memref<5x128xf32, #tpu.memory_space<vmem>>, %arg4: memref<1x128xf32, #tpu.memory_space<vmem>>) attributes {dimension_semantics = [#tpu.dimension_semantics<parallel>], iteration_bounds = array<i64: 1>, scalar_prefetch = 0 : i64, scratch_operands = 0 : i64, tpu.core_type = #tpu.core_type<tc>, window_params = [{pipeline_mode = #tpu.pipeline_mode<synchronous>, transform_indices = @transform_0, window_bounds = array<i64: 5, 1>}, {transform_indices = @transform_1, window_bounds = array<i64: 1>}, {transform_indices = @transform_2, window_bounds = array<i64: 5, 128>}, {transform_indices = @transform_3, window_bounds = array<i64: 1, 128>}]} {
    %c0 = arith.constant 0 : index
    %c0_0 = arith.constant 0 : index
    %0 = vector.load %arg3[%c0, %c0_0] : memref<5x128xf32, #tpu.memory_space<vmem>>, vector<5x128xf32>
    %c0_1 = arith.constant 0 : index
    %c0_2 = arith.constant 0 : index
    %1 = vector.load %arg1[%c0_1, %c0_2] : memref<5x1xf32, #tpu.memory_space<vmem>>, vector<5x1xf32>
    %2 = vector.broadcast %1 : vector<5x1xf32> to vector<5x128xf32>
    %3 = arith.mulf %0, %2 : vector<5x128xf32>
    %cst = arith.constant dense<0.000000e+00> : vector<128xf32>
    %4 = vector.multi_reduction <add>, %3, %cst [0] : vector<5x128xf32> to vector<128xf32>
    %5 = vector.shape_cast %4 : vector<128xf32> to vector<1x128xf32>
    %c0_3 = arith.constant 0 : index
    %6 = memref.load %arg2[%c0_3] : memref<1xf32, #tpu.memory_space<smem>>
    %7 = vector.broadcast %6 : f32 to vector<1x128xf32>
    %8 = arith.addf %5, %7 : vector<1x128xf32>
    %c0_4 = arith.constant 0 : index
    %c0_5 = arith.constant 0 : index
    %9 = vector.load %arg4[%c0_4, %c0_5] : memref<1x128xf32, #tpu.memory_space<vmem>>, vector<1x128xf32>
    tpu.vector_store %arg4[%c0_4, %c0_5], %8 {strides = array<i32>} : memref<1x128xf32, #tpu.memory_space<vmem>>, vector<1x128xf32>,
    return
  }
  func.func @transform_0(%arg0: i32) -> (i32, i32) {
    %c0_i32 = arith.constant 0 : i32
    %c0_i32_0 = arith.constant 0 : i32
    %c0_i32_1 = arith.constant 0 : i32
    return %c0_i32, %c0_i32_0 : i32, i32
  }
  func.func @transform_1(%arg0: i32) -> i32 {
    %c0_i32 = arith.constant 0 : i32
    %c0_i32_0 = arith.constant 0 : i32
    return %c0_i32 : i32
  }
  func.func @transform_2(%arg0: i32) -> (i32, i32) {
    %c0_i32 = arith.constant 0 : i32
    %c0_i32_0 = arith.constant 0 : i32
    return %c0_i32, %arg0 : i32, i32
  }
  func.func @transform_3(%arg0: i32) -> (i32, i32) {
    %c0_i32 = arith.constant 0 : i32
    %c0_i32_0 = arith.constant 0 : i32
    return %c0_i32, %arg0 : i32, i32
  }
}

</mosaic_0001>

<bundles_post_ra>
// kernel: tpu_custom_call.1
= control target key start
LH: loop header
LB: loop body
LE: loop exit
PB: predicated region body
PF: predicated region fallthrough
CT: control target
= control target key end

     0   :  { %s115_s0 = inlined_call_operand.vmem [shape: f32[5,1], index: 0, kind: input, shape index: {}]   ;;  %s116_s1 = inlined_call_operand.<no memory space> [shape: f32[1], index: 1, kind: input, shape index: {}]   ;;  %s117_s2 = inlined_call_operand.vmem [shape: f32[5,128], index: 2, kind: input, shape index: {}]   ;;  %s118_s3 = inlined_call_operand.hbm [shape: f32[1,128], index: 3, kind: output, shape index: {}]  }
   0x1   :  { %v17_v0 = vld [vmem:[%s115_s0] sm:$0x1f] }
   0x2   :  { %9 = vsyncpa [#allocation4], 0  ;;  %v81_v1 = vmov 0   ;;  %v16_v2 = vld [vmem:[%s117_s2] sm:$0x1f]  ;;  %vm24_vm0 = vcmask 1044480   ;;  %v33_v11 = vstv %s116_s1 }
   0x3   :  { %54 = vset.pattern.permute.xlu0 %v81_v1  ;;  %s82_s0 = smov [#allocation3]   ;;  %s43_s21 = sshll.u32 %s118_s3, 4  ;;  %s44_s21 = int_to_ptr.hbm [resolvable:$true] %s43_s21 }
   0x4   :  { %20 = vperm.xlu0 %54, %v17_v0   ;;  %s41_s18 = sshll.u32 %s82_s0, 4  ;;  %s42_s18 = int_to_ptr.vmem [resolvable:$true] %s41_s18 }
  0x76   :  { %v21_v3 = vpop.permute.xlu0 %20 }
  0x77   :  { %v23_v4 = vmul.f32 %v21_v3, %v16_v2 }
  0x79   :  { %v25_v5 = vsel %vm24_vm0, %v23_v4, 0.0 }
  0x7a   :  { %v26_v6 = vrot.slane %v25_v5, 4 }
  0x7c   :  { %v27_v7 = vadd.f32 %v26_v6, %v25_v5 }
  0x7e   :  { %v28_v8 = vrot.slane %v27_v7, 2 }
  0x80   :  { %v29_v9 = vadd.f32 %v28_v8, %v27_v7 }
  0x82   :  { %v30_v10 = vrot.slane %v29_v9, 1 }
  0x84   :  { %v31_v12 = vadd.f32 %v30_v10, %v29_v9 }
  0x86   :  { %v34_v13 = vadd.f32 %v33_v11, %v31_v12 }
  0x88   :  { %35 = vst [vmem:[#allocation3] sm:$0x1] %v34_v13 }
  0x89   :  { %46 = dma.vmem_to_hbm [thread:$0]  %s42_s18, 16, %s44_s21, [#allocation4]  }
  0x8a   :  { %79 = dma.done.wait [#allocation4], 16  }
  0x8b   :  { %80 = vsyncadd [#allocation4], 4294967280 }
  0x8c   :  { %51 = vsyncpa [#allocation4], 1 }

</bundles_post_ra>
